<compile_context>
chip_gen: v5e
topology: v5e:2x2
jax: 0.10.0
libtpu: 0.0.40
codegen_flags: <defaults>
</compile_context>

<pallas_src>
import jax
import jax.numpy as jnp
from jax import lax
from jax.experimental import pallas as pl
from jax.experimental.pallas import tpu as pltpu


def postpool_kernel(e_ref,
                    w1_ref, b1_ref, g1_ref, be1_ref,
                    w2_ref, b2_ref, g2_ref, be2_ref,
                    wp_ref, bp_ref,
                    gp_ref, bep_ref,      # SMEM scalars (1,)
                    out_ref):             # (N, 2*c_dim) lane-combined output
    eps_hidden = 1e-5   # default BatchNorm1d eps
    eps_params = 1e-3   # bn_params eps=0.001

    def linear_bn_relu(x, w_ref, b_ref, g_ref, be_ref):
        # Linear on MXU, f32 accumulate.
        h = jnp.dot(x, w_ref[...], preferred_element_type=jnp.float32) + b_ref[...]
        # BatchNorm1d(hidden_dim): per-feature stats over batch (biased var).
        mu = jnp.mean(h, axis=0, keepdims=True)
        var = jnp.mean((h - mu) ** 2, axis=0, keepdims=True)
        h = g_ref[...] * (h - mu) * lax.rsqrt(var + eps_hidden) + be_ref[...]
        # nonlinearity = ReLU
        return jnp.maximum(h, 0.0)

    x = e_ref[...].astype(jnp.float32)
    h = linear_bn_relu(x, w1_ref, b1_ref, g1_ref, be1_ref)
    h = linear_bn_relu(h, w2_ref, b2_ref, g2_ref, be2_ref)

    # fc_params: (N, H) @ (H, 2C) + (1, 2C)
    p = jnp.dot(h, wp_ref[...], preferred_element_type=jnp.float32) + bp_ref[...]

    # bn_params = BatchNorm1d(1) on (N, 1, 2C): single channel -> statistics
    # over all N*2C elements.  Fused single-pass stats: var = E[p^2] - mu^2.
    mu = jnp.mean(p)
    var = jnp.mean(p * p) - mu * mu
    gp = gp_ref[0]
    bep = bep_ref[0]

    # Single lane-combined write; mean/logvar split happens in the wrapper.
    out_ref[...] = gp * (p - mu) * lax.rsqrt(var + eps_params) + bep


def postpool(e, params, c_dim):
    N, H = e.shape
    (w1, b1, g1, be1, w2, b2, g2, be2, wp, bp, gp, bep) = params

    vmem = pl.BlockSpec(memory_space=pltpu.MemorySpace.VMEM)
    smem = pl.BlockSpec(memory_space=pltpu.MemorySpace.SMEM)

    packed = pl.pallas_call(
        postpool_kernel,
        out_shape=jax.ShapeDtypeStruct((N, 2 * c_dim), jnp.float32),
        # No grid: whole problem is one VMEM-resident block, no 1-step
        # pipelining overhead, no double-buffering of the 13 inputs.
        in_specs=[vmem] * 11 + [smem, smem],
        out_specs=vmem,
    )(e, w1, b1, g1, be1, w2, b2, g2, be2, wp, bp, gp, bep)

    # Free views on the lane-combined result.
    return packed[:, :c_dim], packed[:, c_dim:]


def ref_forward(e, params, c_dim):
    """Pure-JAX reference mirroring the PyTorch forward (training-mode BN, ReLU)."""
    w1, b1, g1, be1, w2, b2, g2, be2, wp, bp, gp, bep = params

    def block(x, w, b, g, be, eps=1e-5):
        h = x @ w + b
        mu = h.mean(axis=0, keepdims=True)
        var = ((h - mu) ** 2).mean(axis=0, keepdims=True)
        h = g * (h - mu) / jnp.sqrt(var + eps) + be
        return jnp.maximum(h, 0.0)

    h = block(e, w1, b1, g1, be1)
    h = block(h, w2, b2, g2, be2)
    p = h @ wp + bp
    mu = p.mean()
    var = ((p - mu) ** 2).mean()
    pn = gp[0] * (p - mu) / jnp.sqrt(var + 1e-3) + bep[0]
    return pn[:, :c_dim], pn[:, c_dim:]


def init_params(key, hidden_dim, c_dim):
    ks = jax.random.split(key, 12)
    s = 0.1
    w1 = s * jax.random.normal(ks[0], (hidden_dim, hidden_dim), jnp.float32)
    b1 = s * jax.random.normal(ks[1], (1, hidden_dim), jnp.float32)
    g1 = 1.0 + s * jax.random.normal(ks[2], (1, hidden_dim), jnp.float32)
    be1 = s * jax.random.normal(ks[3], (1, hidden_dim), jnp.float32)
    w2 = s * jax.random.normal(ks[4], (hidden_dim, hidden_dim), jnp.float32)
    b2 = s * jax.random.normal(ks[5], (1, hidden_dim), jnp.float32)
    g2 = 1.0 + s * jax.random.normal(ks[6], (1, hidden_dim), jnp.float32)
    be2 = s * jax.random.normal(ks[7], (1, hidden_dim), jnp.float32)
    wp = s * jax.random.normal(ks[8], (hidden_dim, 2 * c_dim), jnp.float32)
    bp = s * jax.random.normal(ks[9], (1, 2 * c_dim), jnp.float32)
    gp = 1.0 + s * jax.random.normal(ks[10], (1,), jnp.float32)   # SMEM scalar
    bep = s * jax.random.normal(ks[11], (1,), jnp.float32)        # SMEM scalar
    return (w1, b1, g1, be1, w2, b2, g2, be2, wp, bp, gp, bep)


if __name__ == "__main__":
    N, HIDDEN_DIM, C_DIM = 8, 32, 8   # n_hidden unused in forward path shapes

    key = jax.random.PRNGKey(0)
    k_e, k_p = jax.random.split(key)
    e = jax.random.normal(k_e, (N, HIDDEN_DIM), jnp.float32)
    params = init_params(k_p, HIDDEN_DIM, C_DIM)

    mean, logvar = postpool(e, params, C_DIM)
    jax.block_until_ready((mean, logvar))

    mean_ref, logvar_ref = ref_forward(e, params, C_DIM)
    assert mean.shape == (N, C_DIM) and logvar.shape == (N, C_DIM)
    assert jnp.allclose(mean, mean_ref, rtol=1e-4, atol=1e-4)
    assert jnp.allclose(logvar, logvar_ref, rtol=1e-4, atol=1e-4)

    print("KERNEL_OK")
</pallas_src>

<mosaic_0001>
module attributes {stable_mosaic.version = 11 : i64} {
  func.func @postpool_kernel(%arg0: memref<8x32xf32, #tpu.memory_space<vmem>>, %arg1: memref<32x32xf32, #tpu.memory_space<vmem>>, %arg2: memref<1x32xf32, #tpu.memory_space<vmem>>, %arg3: memref<1x32xf32, #tpu.memory_space<vmem>>, %arg4: memref<1x32xf32, #tpu.memory_space<vmem>>, %arg5: memref<32x32xf32, #tpu.memory_space<vmem>>, %arg6: memref<1x32xf32, #tpu.memory_space<vmem>>, %arg7: memref<1x32xf32, #tpu.memory_space<vmem>>, %arg8: memref<1x32xf32, #tpu.memory_space<vmem>>, %arg9: memref<32x16xf32, #tpu.memory_space<vmem>>, %arg10: memref<1x16xf32, #tpu.memory_space<vmem>>, %arg11: memref<1xf32, #tpu.memory_space<smem>>, %arg12: memref<1xf32, #tpu.memory_space<smem>>, %arg13: memref<8x16xf32, #tpu.memory_space<vmem>>) attributes {dimension_semantics = [], scalar_prefetch = 0 : i64, scratch_operands = 0 : i64, tpu.core_type = #tpu.core_type<tc>} {
    %c0 = arith.constant 0 : index
    %c0_0 = arith.constant 0 : index
    %0 = vector.load %arg0[%c0, %c0_0] : memref<8x32xf32, #tpu.memory_space<vmem>>, vector<8x32xf32>
    %c0_1 = arith.constant 0 : index
    %c0_2 = arith.constant 0 : index
    %1 = vector.load %arg1[%c0_1, %c0_2] : memref<32x32xf32, #tpu.memory_space<vmem>>, vector<32x32xf32>
    %cst = arith.constant dense<0.000000e+00> : vector<8x32xf32>
    %2 = tpu.matmul %0, %1, %cst {dimension_numbers = #tpu.dot_dimension_numbers<[1], [0], [0], [1], [0, 0, 1, 1], [], []>} : vector<8x32xf32>, vector<32x32xf32>, vector<8x32xf32> -> vector<8x32xf32>
    %c0_3 = arith.constant 0 : index
    %c0_4 = arith.constant 0 : index
    %3 = vector.load %arg2[%c0_3, %c0_4] : memref<1x32xf32, #tpu.memory_space<vmem>>, vector<1x32xf32>
    %4 = vector.broadcast %3 : vector<1x32xf32> to vector<8x32xf32>
    %5 = arith.addf %2, %4 : vector<8x32xf32>
    %cst_5 = arith.constant dense<0.000000e+00> : vector<32xf32>
    %6 = vector.multi_reduction <add>, %5, %cst_5 [0] : vector<8x32xf32> to vector<32xf32>
    %7 = vector.shape_cast %6 : vector<32xf32> to vector<1x32xf32>
    %cst_6 = arith.constant 8.000000e+00 : f32
    %8 = vector.broadcast %cst_6 : f32 to vector<1x32xf32>
    %9 = arith.divf %7, %8 : vector<1x32xf32>
    %10 = vector.broadcast %9 : vector<1x32xf32> to vector<8x32xf32>
    %11 = arith.subf %5, %10 : vector<8x32xf32>
    %12 = arith.mulf %11, %11 : vector<8x32xf32>
    %cst_7 = arith.constant dense<0.000000e+00> : vector<32xf32>
    %13 = vector.multi_reduction <add>, %12, %cst_7 [0] : vector<8x32xf32> to vector<32xf32>
    %14 = vector.shape_cast %13 : vector<32xf32> to vector<1x32xf32>
    %cst_8 = arith.constant 8.000000e+00 : f32
    %15 = vector.broadcast %cst_8 : f32 to vector<1x32xf32>
    %16 = arith.divf %14, %15 : vector<1x32xf32>
    %c0_9 = arith.constant 0 : index
    %c0_10 = arith.constant 0 : index
    %17 = vector.load %arg3[%c0_9, %c0_10] : memref<1x32xf32, #tpu.memory_space<vmem>>, vector<1x32xf32>
    %18 = vector.broadcast %9 : vector<1x32xf32> to vector<8x32xf32>
    %19 = arith.subf %5, %18 : vector<8x32xf32>
    %20 = vector.broadcast %17 : vector<1x32xf32> to vector<8x32xf32>
    %21 = arith.mulf %20, %19 : vector<8x32xf32>
    %cst_11 = arith.constant 9.99999974E-6 : f32
    %22 = vector.broadcast %cst_11 : f32 to vector<1x32xf32>
    %23 = arith.addf %16, %22 : vector<1x32xf32>
    %24 = math.rsqrt %23 : vector<1x32xf32>
    %25 = vector.broadcast %24 : vector<1x32xf32> to vector<8x32xf32>
    %26 = arith.mulf %21, %25 : vector<8x32xf32>
    %c0_12 = arith.constant 0 : index
    %c0_13 = arith.constant 0 : index
    %27 = vector.load %arg4[%c0_12, %c0_13] : memref<1x32xf32, #tpu.memory_space<vmem>>, vector<1x32xf32>
    %28 = vector.broadcast %27 : vector<1x32xf32> to vector<8x32xf32>
    %29 = arith.addf %26, %28 : vector<8x32xf32>
    %cst_14 = arith.constant 0.000000e+00 : f32
    %30 = vector.broadcast %cst_14 : f32 to vector<8x32xf32>
    %31 = arith.maximumf %29, %30 : vector<8x32xf32>
    %c0_15 = arith.constant 0 : index
    %c0_16 = arith.constant 0 : index
    %32 = vector.load %arg5[%c0_15, %c0_16] : memref<32x32xf32, #tpu.memory_space<vmem>>, vector<32x32xf32>
    %cst_17 = arith.constant dense<0.000000e+00> : vector<8x32xf32>
    %33 = tpu.matmul %31, %32, %cst_17 {dimension_numbers = #tpu.dot_dimension_numbers<[1], [0], [0], [1], [0, 0, 1, 1], [], []>} : vector<8x32xf32>, vector<32x32xf32>, vector<8x32xf32> -> vector<8x32xf32>
    %c0_18 = arith.constant 0 : index
    %c0_19 = arith.constant 0 : index
    %34 = vector.load %arg6[%c0_18, %c0_19] : memref<1x32xf32, #tpu.memory_space<vmem>>, vector<1x32xf32>
    %35 = vector.broadcast %34 : vector<1x32xf32> to vector<8x32xf32>
    %36 = arith.addf %33, %35 : vector<8x32xf32>
    %cst_20 = arith.constant dense<0.000000e+00> : vector<32xf32>
    %37 = vector.multi_reduction <add>, %36, %cst_20 [0] : vector<8x32xf32> to vector<32xf32>
    %38 = vector.shape_cast %37 : vector<32xf32> to vector<1x32xf32>
    %cst_21 = arith.constant 8.000000e+00 : f32
    %39 = vector.broadcast %cst_21 : f32 to vector<1x32xf32>
    %40 = arith.divf %38, %39 : vector<1x32xf32>
    %41 = vector.broadcast %40 : vector<1x32xf32> to vector<8x32xf32>
    %42 = arith.subf %36, %41 : vector<8x32xf32>
    %43 = arith.mulf %42, %42 : vector<8x32xf32>
    %cst_22 = arith.constant dense<0.000000e+00> : vector<32xf32>
    %44 = vector.multi_reduction <add>, %43, %cst_22 [0] : vector<8x32xf32> to vector<32xf32>
    %45 = vector.shape_cast %44 : vector<32xf32> to vector<1x32xf32>
    %cst_23 = arith.constant 8.000000e+00 : f32
    %46 = vector.broadcast %cst_23 : f32 to vector<1x32xf32>
    %47 = arith.divf %45, %46 : vector<1x32xf32>
    %c0_24 = arith.constant 0 : index
    %c0_25 = arith.constant 0 : index
    %48 = vector.load %arg7[%c0_24, %c0_25] : memref<1x32xf32, #tpu.memory_space<vmem>>, vector<1x32xf32>
    %49 = vector.broadcast %40 : vector<1x32xf32> to vector<8x32xf32>
    %50 = arith.subf %36, %49 : vector<8x32xf32>
    %51 = vector.broadcast %48 : vector<1x32xf32> to vector<8x32xf32>
    %52 = arith.mulf %51, %50 : vector<8x32xf32>
    %cst_26 = arith.constant 9.99999974E-6 : f32
    %53 = vector.broadcast %cst_26 : f32 to vector<1x32xf32>
    %54 = arith.addf %47, %53 : vector<1x32xf32>
    %55 = math.rsqrt %54 : vector<1x32xf32>
    %56 = vector.broadcast %55 : vector<1x32xf32> to vector<8x32xf32>
    %57 = arith.mulf %52, %56 : vector<8x32xf32>
    %c0_27 = arith.constant 0 : index
    %c0_28 = arith.constant 0 : index
    %58 = vector.load %arg8[%c0_27, %c0_28] : memref<1x32xf32, #tpu.memory_space<vmem>>, vector<1x32xf32>
    %59 = vector.broadcast %58 : vector<1x32xf32> to vector<8x32xf32>
    %60 = arith.addf %57, %59 : vector<8x32xf32>
    %cst_29 = arith.constant 0.000000e+00 : f32
    %61 = vector.broadcast %cst_29 : f32 to vector<8x32xf32>
    %62 = arith.maximumf %60, %61 : vector<8x32xf32>
    %c0_30 = arith.constant 0 : index
    %c0_31 = arith.constant 0 : index
    %63 = vector.load %arg9[%c0_30, %c0_31] : memref<32x16xf32, #tpu.memory_space<vmem>>, vector<32x16xf32>
    %cst_32 = arith.constant dense<0.000000e+00> : vector<8x16xf32>
    %64 = tpu.matmul %62, %63, %cst_32 {dimension_numbers = #tpu.dot_dimension_numbers<[1], [0], [0], [1], [0, 0, 1, 1], [], []>} : vector<8x32xf32>, vector<32x16xf32>, vector<8x16xf32> -> vector<8x16xf32>
    %c0_33 = arith.constant 0 : index
    %c0_34 = arith.constant 0 : index
    %65 = vector.load %arg10[%c0_33, %c0_34] : memref<1x16xf32, #tpu.memory_space<vmem>>, vector<1x16xf32>
    %66 = vector.broadcast %65 : vector<1x16xf32> to vector<8x16xf32>
    %67 = arith.addf %64, %66 : vector<8x16xf32>
    %68 = vector.shape_cast %67 : vector<8x16xf32> to vector<1x8x16xf32>
    %cst_35 = arith.constant dense<0.000000e+00> : vector<1xf32>
    %69 = vector.multi_reduction <add>, %68, %cst_35 [1, 2] : vector<1x8x16xf32> to vector<1xf32>
    %70 = vector.shape_cast %69 : vector<1xf32> to vector<1x1x1xf32>
    %71 = vector.extract %70[0, 0, 0] : f32 from vector<1x1x1xf32>
    %cst_36 = arith.constant 1.280000e+02 : f32
    %72 = arith.divf %71, %cst_36 : f32
    %73 = arith.mulf %67, %67 : vector<8x16xf32>
    %74 = vector.shape_cast %73 : vector<8x16xf32> to vector<1x8x16xf32>
    %cst_37 = arith.constant dense<0.000000e+00> : vector<1xf32>
    %75 = vector.multi_reduction <add>, %74, %cst_37 [1, 2] : vector<1x8x16xf32> to vector<1xf32>
    %76 = vector.shape_cast %75 : vector<1xf32> to vector<1x1x1xf32>
    %77 = vector.extract %76[0, 0, 0] : f32 from vector<1x1x1xf32>
    %cst_38 = arith.constant 1.280000e+02 : f32
    %78 = arith.divf %77, %cst_38 : f32
    %79 = arith.mulf %72, %72 : f32
    %80 = arith.subf %78, %79 : f32
    %c0_39 = arith.constant 0 : index
    %81 = memref.load %arg11[%c0_39] : memref<1xf32, #tpu.memory_space<smem>>
    %c0_40 = arith.constant 0 : index
    %82 = memref.load %arg12[%c0_40] : memref<1xf32, #tpu.memory_space<smem>>
    %83 = vector.broadcast %72 : f32 to vector<8x16xf32>
    %84 = arith.subf %67, %83 : vector<8x16xf32>
    %85 = vector.broadcast %81 : f32 to vector<8x16xf32>
    %86 = arith.mulf %85, %84 : vector<8x16xf32>
    %cst_41 = arith.constant 1.000000e-03 : f32
    %87 = arith.addf %80, %cst_41 : f32
    %88 = math.rsqrt %87 : f32
    %89 = vector.broadcast %88 : f32 to vector<8x16xf32>
    %90 = arith.mulf %86, %89 : vector<8x16xf32>
    %91 = vector.broadcast %82 : f32 to vector<8x16xf32>
    %92 = arith.addf %90, %91 : vector<8x16xf32>
    %c0_42 = arith.constant 0 : index
    %c0_43 = arith.constant 0 : index
    %93 = vector.load %arg13[%c0_42, %c0_43] : memref<8x16xf32, #tpu.memory_space<vmem>>, vector<8x16xf32>
    tpu.vector_store %arg13[%c0_42, %c0_43], %92 {strides = array<i32>} : memref<8x16xf32, #tpu.memory_space<vmem>>, vector<8x16xf32>,
    return
  }
}

</mosaic_0001>

<bundles_post_ra>
// kernel: tpu_custom_call.1
= control target key start
LH: loop header
LB: loop body
LE: loop exit
PB: predicated region body
PF: predicated region fallthrough
CT: control target
= control target key end

     0   :  { %20 = vsyncpa [#allocation5], 0  ;;  %s562_s0 = inlined_call_operand.vmem [shape: f32[8,32], index: 0, kind: input, shape index: {}]   ;;  %s563_s1 = inlined_call_operand.vmem [shape: f32[32,32], index: 1, kind: input, shape index: {}]   ;;  %s564_s2 = inlined_call_operand.vmem [shape: f32[1,32], index: 2, kind: input, shape index: {}]   ;;  %s565_s3 = inlined_call_operand.vmem [shape: f32[1,32], index: 3, kind: input, shape index: {}]   ;;  %s566_s4 = inlined_call_operand.vmem [shape: f32[1,32], index: 4, kind: input, shape index: {}]   ;;  %s567_s5 = inlined_call_operand.hbm [shape: f32[32,32], index: 5, kind: input, shape index: {}]   ;;  %s568_s6 = inlined_call_operand.vmem [shape: f32[1,32], index: 6, kind: input, shape index: {}]   ;;  %s569_s7 = inlined_call_operand.vmem [shape: f32[1,32], index: 7, kind: input, shape index: {}]   ;;  %s570_s8 = inlined_call_operand.vmem [shape: f32[1,32], index: 8, kind: input, shape index: {}]   ;;  %s571_s9 = inlined_call_operand.vmem [shape: f32[32,16], index: 9, kind: input, shape index: {}]   ;;  %s572_s10 = inlined_call_operand.vmem [shape: f32[1,16], index: 10, kind: input, shape index: {}]   ;;  %s573_s11 = inlined_call_operand.<no memory space> [shape: f32[1], index: 11, kind: input, shape index: {}]   ;;  %s574_s12 = inlined_call_operand.<no memory space> [shape: f32[1], index: 12, kind: input, shape index: {}]   ;;  %s575_s13 = inlined_call_operand.hbm [shape: f32[8,16], index: 13, kind: output, shape index: {}]  }
   0x1   :  { %21 = vsyncpa [#allocation6], 0  ;;  %s36_s27 = sshll.u32 %s567_s5, 4  ;;  %s416_s28 = smov [#allocation4]   ;;  %s37_s27 = int_to_ptr.hbm [resolvable:$true] %s36_s27 }
   0x2   :  { %s38_s29 = sshll.u32 %s416_s28, 4  ;;  %s417_s30 = smov 128   ;;  %s39_s29 = int_to_ptr.vmem [resolvable:$true] %s38_s29 }
   0x3   :  { %s418_s14 = smov 8  }
   0x4   :  { %44 = dma.hbm_to_vmem [thread:$0]  %s37_s27, 512, %s39_s29, [#allocation5], %s417_s30, %s417_s30, %s418_s14  }
   0x5   :  { %412 = dma.done.wait [#allocation5], 512  }
   0x6   :  { %413 = vsyncadd [#allocation5], 4294966784  ;;  %v67_v0 = vld [vmem:[%s563_s1 + $0x18] sm:$0xff]  ;;  %v66_v1 = vld [vmem:[%s563_s1 + $0x10] sm:$0xff]  ;;  %vm72_vm0 = vcmask 261120   ;;  %v419_v5 = vmov 8.0  }
   0x7   :  { %88 = vmatpush.msra.mxu0 %v67_v0  ;;  %v65_v2 = vld [vmem:[%s563_s1 + $0x8] sm:$0xff]  ;;  %v64_v3 = vld [vmem:[%s563_s1] sm:$0xff]  ;;  %354 = vrcp.f32 %v419_v5  ;;  %v147_v16 = vld [vmem:[#allocation4 + $0x18] sm:$0xff]  ;;  %vm247_vm8 = vcmask 130048   ;;  %s421_s28 = smov [#allocation7]   ;;  %s320_s30 = sshll.u32 %s575_s13, 4  ;;  %s321_s30 = int_to_ptr.hbm [resolvable:$true] %s320_s30 }
   0x8   :  { %v63_v4 = vld [vmem:[%s562_s0] sm:$0xff]  ;;  %v146_v17 = vld [vmem:[#allocation4 + $0x10] sm:$0xff]  ;;  %167 = vmatpush.msra.mxu1 %v147_v16  ;;  %v145_v20 = vld [vmem:[#allocation4 + $0x8] sm:$0xff] }
   0x9   :  { %89 = vmatpush.msra.mxu0 %v66_v1  ;;  %v347_v7 = vld [vmem:[%s564_s2] ss:$0 sm:$0xff]  ;;  %v219_v57 = vld [vmem:[%s571_s9 + $0x18] sm:$0xff]  ;;  %v218_v58 = vld [vmem:[%s571_s9 + $0x10] sm:$0xff] }
   0xa   :  { %168 = vmatpush.msra.mxu1 %v146_v17  ;;  %v144_v22 = vld [vmem:[#allocation4] sm:$0xff]  ;;  %239 = vmatpush.msra.mxu2 %v219_v57  ;;  %v217_v60 = vld [vmem:[%s571_s9 + $0x8] sm:$0xff] }
   0xb   :  { %90 = vmatpush.msra.mxu0 %v65_v2  ;;  %v348_v42 = vld [vmem:[%s565_s3] ss:$0 sm:$0xff]  ;;  %s318_s3 = sshll.u32 %s421_s28, 4  ;;  %s319_s3 = int_to_ptr.vmem [resolvable:$true] %s318_s3 }
   0xc   :  { %169 = vmatpush.msra.mxu1 %v145_v20  ;;  %v349_v46 = vld [vmem:[%s566_s4] ss:$0 sm:$0xff]  ;;  %240 = vmatpush.msra.mxu2 %v218_v58 }
   0xd   :  { %91 = vmatpush.msra.mxu0 %v64_v3  ;;  %v355_v6 = vpop.eup %354  ;;  %v350_v51 = vld [vmem:[%s568_s6] ss:$0 sm:$0xff] }
   0xe   :  { %330 = vmatmul.msk.f32.vlgmr.msra.gmra.mxu0 %vm72_vm0, %v63_v4  ;;  %v104_v8 = vmul.f32 8.0, %v355_v6  ;;  %vm108_vm1 = vweird.f32 %v355_v6  ;;  %170 = vmatpush.msra.mxu1 %v144_v22  ;;  %v216_v62 = vld [vmem:[%s571_s9] sm:$0xff] }
   0xf   :  { %241 = vmatpush.msra.mxu2 %v217_v60  ;;  %v351_v17 = vld [vmem:[%s569_s7] ss:$0 sm:$0xff] }
  0x10   :  { %v105_v11 = vsub.f32 1.0, %v104_v8 }
  0x11   :  { %242 = vmatpush.msra.mxu2 %v216_v62 }
  0x12   :  { %v106_v14 = vmul.f32 %v355_v6, %v105_v11 }
  0x14   :  { %v107_v19 = vadd.f32 %v355_v6, %v106_v14 }
  0x16   :  { %v109_v24 = vsel %vm108_vm1, %v355_v6, %v107_v19 }
  0x8b   :  { %v93_v9 = vpop.f32.mrf.mxu0 }
  0x8c   :  { %v94_v10 = vadd.f32 %v347_v7, %v93_v9 }
  0x8e   :  { %v96_v12 = vsel %vm72_vm0, %v94_v10, 0.0 }
  0x8f   :  { %v97_v13 = vrot.slane %v96_v12, 4 }
  0x91   :  { %v98_v15 = vadd.f32 %v97_v13, %v96_v12 }
  0x93   :  { %v99_v18 = vrot.slane %v98_v15, 2 }
  0x95   :  { %v100_v21 = vadd.f32 %v99_v18, %v98_v15 }
  0x97   :  { %v101_v23 = vrot.slane %v100_v21, 1 }
  0x99   :  { %v102_v25 = vadd.f32 %v101_v23, %v100_v21  ;;  %v352_v21 = vld [vmem:[%s570_s8] ss:$0 sm:$0xff] }
  0x9b   :  { %v110_v26 = vmul.f32 %v109_v24, %v102_v25 }
  0x9d   :  { %v111_v27 = vsub.f32 %v94_v10, %v110_v26  ;;  %v353_v26 = vld [vmem:[%s572_s10] ss:$0 sm:$0xff] }
  0x9f   :  { %v112_v28 = vmul.f32 %v111_v27, %v111_v27  ;;  %v125_v45 = vmul.f32 %v348_v42, %v111_v27 }
  0xa1   :  { %v113_v29 = vsel %vm72_vm0, %v112_v28, 0.0 }
  0xa2   :  { %v114_v30 = vrot.slane %v113_v29, 4 }
  0xa4   :  { %v115_v31 = vadd.f32 %v114_v30, %v113_v29 }
  0xa6   :  { %v116_v32 = vrot.slane %v115_v31, 2 }
  0xa8   :  { %v117_v33 = vadd.f32 %v116_v32, %v115_v31  ;;  %v420_v32 = vmov 128.0  }
  0xaa   :  { %v118_v34 = vrot.slane %v117_v33, 1 }
  0xac   :  { %v119_v35 = vadd.f32 %v118_v34, %v117_v33 }
  0xae   :  { %v120_v36 = vmul.f32 %v119_v35, %v109_v24 }
  0xb0   :  { %v126_v37 = vadd.f32 1e-05, %v120_v36 }
  0xb2   :  { %356 = vrsqrt.f32 %v126_v37  ;;  %vm133_vm3 = vweird.f32 %v126_v37 }
  0xb8   :  { %v357_v38 = vpop.eup %356 }
  0xb9   :  { %v128_v39 = vmul.f32 %v357_v38, %v126_v37  ;;  %vm134_vm2 = vweird.f32 %v357_v38 }
  0xba   :  { %vm135_vm4 = vmor %vm133_vm3, %vm134_vm2 }
  0xbb   :  { %v129_v40 = vmul.f32 %v357_v38, %v128_v39 }
  0xbd   :  { %v130_v41 = vmul.f32 0.5, %v129_v40 }
  0xbf   :  { %v131_v43 = vsub.f32 1.5, %v130_v41 }
  0xc1   :  { %v132_v44 = vmul.f32 %v357_v38, %v131_v43 }
  0xc3   :  { %v136_v47 = vsel %vm135_vm4, %v357_v38, %v132_v44 }
  0xc4   :  { %v137_v48 = vmul.f32 %v136_v47, %v125_v45 }
  0xc6   :  { %v142_v49 = vadd.f32 %v349_v46, %v137_v48 }
  0xc8   :  { %v143_v50 = vmax.f32 %v142_v49, 0.0 }
  0xca   :  { %331 = vmatmul.msk.f32.vlgmr.msra.gmra.mxu1 %vm72_vm0, %v143_v50 }
 0x147   :  { %v172_v52 = vpop.f32.mrf.mxu1 }
 0x148   :  { %v173_v53 = vadd.f32 %v350_v51, %v172_v52 }
 0x14a   :  { %v175_v54 = vsel %vm72_vm0, %v173_v53, 0.0 }
 0x14b   :  { %v176_v55 = vrot.slane %v175_v54, 4 }
 0x14d   :  { %v177_v56 = vadd.f32 %v176_v55, %v175_v54 }
 0x14f   :  { %v178_v59 = vrot.slane %v177_v56, 2 }
 0x151   :  { %v179_v61 = vadd.f32 %v178_v59, %v177_v56 }
 0x153   :  { %v180_v63 = vrot.slane %v179_v61, 1 }
 0x155   :  { %v181_v0 = vadd.f32 %v180_v63, %v179_v61  ;;  %v293_v63 = vstv %s573_s11 }
 0x157   :  { %v182_v1 = vmul.f32 %v181_v0, %v109_v24 }
 0x159   :  { %v183_v2 = vsub.f32 %v173_v53, %v182_v1 }
 0x15b   :  { %v184_v3 = vmul.f32 %v183_v2, %v183_v2  ;;  %v197_v20 = vmul.f32 %v351_v17, %v183_v2  ;;  %v310_v2 = vstv %s574_s12 }
 0x15d   :  { %v185_v4 = vsel %vm72_vm0, %v184_v3, 0.0 }
 0x15e   :  { %v186_v5 = vrot.slane %v185_v4, 4 }
 0x160   :  { %v187_v6 = vadd.f32 %v186_v5, %v185_v4 }
 0x162   :  { %v188_v7 = vrot.slane %v187_v6, 2 }
 0x164   :  { %v189_v8 = vadd.f32 %v188_v7, %v187_v6 }
 0x166   :  { %v190_v9 = vrot.slane %v189_v8, 1 }
 0x168   :  { %v191_v10 = vadd.f32 %v190_v9, %v189_v8 }
 0x16a   :  { %v192_v11 = vmul.f32 %v191_v10, %v109_v24 }
 0x16c   :  { %v198_v12 = vadd.f32 1e-05, %v192_v11 }
 0x16e   :  { %358 = vrsqrt.f32 %v198_v12  ;;  %vm205_vm6 = vweird.f32 %v198_v12 }
 0x16f   :  { %360 = vrcp.f32 %v420_v32 }
 0x174   :  { %v359_v13 = vpop.eup %358 }
 0x175   :  { %v200_v14 = vmul.f32 %v359_v13, %v198_v12  ;;  %vm206_vm5 = vweird.f32 %v359_v13  ;;  %v361_v33 = vpop.eup %360 }
 0x176   :  { %vm207_vm7 = vmor %vm205_vm6, %vm206_vm5  ;;  %v259_v34 = vmul.f32 128.0, %v361_v33  ;;  %vm263_vm9 = vweird.f32 %v361_v33 }
 0x177   :  { %v201_v15 = vmul.f32 %v359_v13, %v200_v14 }
 0x178   :  { %v260_v35 = vsub.f32 1.0, %v259_v34 }
 0x179   :  { %v202_v16 = vmul.f32 0.5, %v201_v15 }
 0x17a   :  { %v261_v39 = vmul.f32 %v361_v33, %v260_v35 }
 0x17b   :  { %v203_v18 = vsub.f32 1.5, %v202_v16 }
 0x17c   :  { %v262_v42 = vadd.f32 %v361_v33, %v261_v39 }
 0x17d   :  { %v204_v19 = vmul.f32 %v359_v13, %v203_v18 }
 0x17e   :  { %v264_v48 = vsel %vm263_vm9, %v361_v33, %v262_v42 }
 0x17f   :  { %v208_v22 = vsel %vm207_vm7, %v359_v13, %v204_v19 }
 0x180   :  { %v209_v23 = vmul.f32 %v208_v22, %v197_v20 }
 0x182   :  { %v214_v24 = vadd.f32 %v352_v21, %v209_v23 }
 0x184   :  { %v215_v25 = vmax.f32 %v214_v24, 0.0 }
 0x186   :  { %332 = vmatmul.msk.f32.vlgmr.msra.gmra.mxu2 %vm72_vm0, %v215_v25 }
 0x209   :  { %v244_v27 = vpop.f32.mrf.mxu2 }
 0x20a   :  { %v245_v28 = vadd.f32 %v353_v26, %v244_v27 }
 0x20c   :  { %v248_v29 = vsel %vm247_vm8, %v245_v28, 0.0  ;;  %v267_v30 = vmul.f32 %v245_v28, %v245_v28 }
 0x20d   :  { %249 = vadd.xlane.f32.xlu0 %v248_v29 }
 0x20e   :  { %v268_v31 = vsel %vm247_vm8, %v267_v30, 0.0 }
 0x215   :  { %269 = vadd.xlane.f32.xlu0 %v268_v31 }
 0x280   :  { %v250_v36 = vpop.xlane.xlu0 %249 }
 0x281   :  { %v251_v37 = vrot.slane %v250_v36, 4 }
 0x283   :  { %v252_v38 = vadd.f32 %v251_v37, %v250_v36 }
 0x285   :  { %v253_v40 = vrot.slane %v252_v38, 2 }
 0x287   :  { %v254_v41 = vadd.f32 %v253_v40, %v252_v38 }
 0x288   :  { %v270_v43 = vpop.xlane.xlu0 %269 }
 0x289   :  { %v271_v44 = vrot.slane %v270_v43, 4  ;;  %v255_v45 = vrot.slane %v254_v41, 1 }
 0x28b   :  { %v272_v46 = vadd.f32 %v271_v44, %v270_v43  ;;  %v256_v47 = vadd.f32 %v255_v45, %v254_v41 }
 0x28d   :  { %v273_v49 = vrot.slane %v272_v46, 2  ;;  %333 = vpush %v256_v47 }
 0x28e   :  { %335 = vpush %v264_v48 }
 0x28f   :  { %v274_v50 = vadd.f32 %v273_v49, %v272_v46 }
 0x291   :  { %v275_v51 = vrot.slane %v274_v50, 1 }
 0x293   :  { %v276_v52 = vadd.f32 %v275_v51, %v274_v50 }
 0x295   :  { %337 = vpush %v276_v52 }
 0x2be   :  { %s334_s7 = spop %333 }
 0x2bf   :  { %s336_s8 = spop %335 }
 0x2c0   :  { %s266_s10 = smul.f32 %s336_s8, %s334_s7 }
 0x2c2   :  { %s287_s21 = smul.f32 %s266_s10, %s266_s10  ;;  %v291_v61 = vstv %s266_s10 }
 0x2c3   :  { %v292_v62 = vsub.f32 %v245_v28, %v291_v61 }
 0x2c5   :  { %v294_v0 = vmul.f32 %v293_v63, %v292_v62 }
 0x2c6   :  { %s338_s22 = spop %337 }
 0x2c7   :  { %s286_s23 = smul.f32 %s338_s22, %s336_s8 }
 0x2c9   :  { %s288_s24 = ssub.f32 %s286_s23, %s287_s21 }
 0x2cb   :  { %s295_s25 = sadd.f32 0.001, %s288_s24 }
 0x2cd   :  { %v296_v53 = vstv %s295_s25 }
 0x2ce   :  { %362 = vrsqrt.f32 %v296_v53  ;;  %vm303_vm11 = vweird.f32 %v296_v53 }
 0x2d4   :  { %v363_v54 = vpop.eup %362 }
 0x2d5   :  { %v298_v55 = vmul.f32 %v363_v54, %v296_v53  ;;  %vm304_vm10 = vweird.f32 %v363_v54 }
 0x2d6   :  { %vm305_vm12 = vmor %vm303_vm11, %vm304_vm10 }
 0x2d7   :  { %v299_v56 = vmul.f32 %v363_v54, %v298_v55 }
 0x2d9   :  { %v300_v57 = vmul.f32 0.5, %v299_v56 }
 0x2db   :  { %v301_v58 = vsub.f32 1.5, %v300_v57 }
 0x2dd   :  { %v302_v59 = vmul.f32 %v363_v54, %v301_v58 }
 0x2df   :  { %v306_v60 = vsel %vm305_vm12, %v363_v54, %v302_v59 }
 0x2e0   :  { %339 = vpush %v306_v60 }
 0x311   :  { %s340_s2 = spop %339 }
 0x312   :  { %v308_v1 = vstv %s340_s2 }
 0x313   :  { %v309_v3 = vmul.f32 %v308_v1, %v294_v0 }
 0x315   :  { %v311_v4 = vadd.f32 %v310_v2, %v309_v3 }
 0x317   :  { %312 = vst.msk [vmem:[#allocation7] sm:$0xff] %vm247_vm8, %v311_v4 }
 0x318   :  { %323 = dma.vmem_to_hbm [thread:$0]  %s319_s3, 128, %s321_s30, [#allocation6]  }
 0x319   :  { %414 = dma.done.wait [#allocation6], 128  }
 0x31a   :  { %415 = vsyncadd [#allocation6], 4294967168 }
 0x31b   :  { %328 = vsyncpa [#allocation5], 1 }
 0x31c   :  { %329 = vsyncpa [#allocation6], 1 }

</bundles_post_ra>
